<compile_context>
chip_gen: v6e
topology: v6e:2x2x1
jax: 0.10.0
libtpu: 0.0.40
codegen_flags: <defaults>
</compile_context>

<pallas_src>
import numpy as np

import jax
import jax.numpy as jnp
from jax import lax
from jax.experimental import pallas as pl

BN_EPS = 1e-5


# --------------------------------- kernel ------------------------------------


def basic_block_kernel(x_ref, wk_ref, sh_ref, v_ref, o_ref):
    x = x_ref[...]                      # (N*H, W*C) lane-dense activations
    sm = sh_ref[0]                      # (N*H, N*H): (sm @ y)[r] = y[r-1] in-image
    sp = sh_ref[1]                      # (N*H, N*H): (sp @ y)[r] = y[r+1] in-image
    v = v_ref[...]                      # (8, W*C) bias / affine rows

    def row(i):                         # static (1, W*C) slice for broadcasting
        return v[i:i + 1, :]

    def fire(act, base, b1, b2):
        # squeeze 1x1 + folded bn1 -> squeeze channels land in the 2nd-half lanes
        y1 = jnp.dot(act, wk_ref[base + 0], preferred_element_type=jnp.float32) + b1
        # expand 1x1 (+ bn2 scale) fused with the center row of the depthwise 3x3
        z = jnp.dot(y1, wk_ref[base + 1], preferred_element_type=jnp.float32)
        # depthwise rows h-1 / h+1: banded lane matmul, then a row-shift matmul
        zm = jnp.dot(y1, wk_ref[base + 2], preferred_element_type=jnp.float32)
        zp = jnp.dot(y1, wk_ref[base + 3], preferred_element_type=jnp.float32)
        z = z + jnp.dot(sm, zm, preferred_element_type=jnp.float32)
        z = z + jnp.dot(sp, zp, preferred_element_type=jnp.float32)
        # bn2 bias + skip (inplanes == planes, stride == 1) + relu
        return jnp.maximum(z + b2 + act, 0.0)

    h = fire(x, 0, row(0), row(1))                         # conv1 (fire module)
    h = jnp.maximum(h * row(4) + row(5), 0.0)              # bn1 + relu
    h = fire(h, 4, row(2), row(3))                         # conv2 (fire module)
    o_ref[...] = jnp.maximum(h * row(6) + row(7) + x, 0.0)  # bn2 + residual + relu


# --------------------------------- wrapper ------------------------------------


@jax.jit
def basic_block_pallas(x_nchw, packed):
    N, C, H, W = x_nchw.shape
    # NCHW -> NHWC -> lane-dense (N*H, W*C) slab (W*C == 128 -> full vreg width).
    x = jnp.transpose(x_nchw, (0, 2, 3, 1)).reshape(N * H, W * C)
    out = pl.pallas_call(
        basic_block_kernel,
        out_shape=jax.ShapeDtypeStruct((N * H, W * C), jnp.float32),
    )(x, packed["wk"], packed["shift"], packed["vecs"])
    return jnp.transpose(out.reshape(N, H, W, C), (0, 3, 1, 2))


# --------------------------- host-side param packing --------------------------


def _fold_fire(p, W, C):
    """Fold BN into weights, build lane-expanded (W*C, W*C) matmul operands."""
    Cm = int(p["w1"].shape[1])
    Ch = C // 2
    assert Cm == Ch, "kernel assumes sr == 2 (squeeze width == expand width)"

    w1 = np.asarray(p["w1"], np.float32)          # (C, Cm)
    bn1s = np.asarray(p["bn1s"], np.float32)
    bn1b = np.asarray(p["bn1b"], np.float32)
    wa = np.asarray(p["wa"], np.float32)          # (Cm, Ch)
    wd = np.asarray(p["wd"], np.float32)          # (3, 3, Cm)
    bn2s = np.asarray(p["bn2s"], np.float32)
    bn2b = np.asarray(p["bn2b"], np.float32)

    w1f = w1 * bn1s[None, :]                      # squeeze  * bn1 scale
    waf = wa * bn2s[None, :Ch]                    # expand1x1 * bn2 scale (1st half)
    wdf = wd * bn2s[None, None, Ch:]              # depthwise * bn2 scale (2nd half)

    eyeW = np.eye(W, dtype=np.float32)

    # squeeze 1x1: all C input lanes -> second-half channel slots
    s1 = np.zeros((C, C), np.float32)
    s1[:, Ch:] = w1f
    K1 = np.kron(eyeW, s1)                                        # (W*C, W*C)
    b1 = np.tile(np.concatenate([np.zeros(Ch, np.float32), bn1b]), W)

    # expand 1x1: reads second-half slots, writes first-half slots
    sA = np.zeros((C, C), np.float32)
    sA[Ch:, :Ch] = waf
    KA = np.kron(eyeW, sA)

    # depthwise 3x3 as three banded lane matmuls (one per vertical tap kh)
    Ms = []
    for kh in range(3):
        M = np.zeros((W * C, W * C), np.float32)
        for w in range(W):
            for dw in (-1, 0, 1):
                wp = w + dw
                if 0 <= wp < W:
                    for m in range(Cm):
                        M[wp * C + Ch + m, w * C + Ch + m] = wdf[kh, dw + 1, m]
        Ms.append(M)

    KA0 = KA + Ms[1]                               # center row fused with 1x1 branch
    b2 = np.tile(bn2b, W)
    return K1, b1, KA0, Ms[0], Ms[2], b2


def _shift_mats(N, H):
    """Row-shift matrices with zero padding at image (and batch) boundaries."""
    NH = N * H
    Sm = np.zeros((NH, NH), np.float32)   # (Sm @ y)[r] = y[r-1] within the image
    Sp = np.zeros((NH, NH), np.float32)   # (Sp @ y)[r] = y[r+1] within the image
    for r in range(NH):
        h = r % H
        if h > 0:
            Sm[r, r - 1] = 1.0
        if h < H - 1:
            Sp[r, r + 1] = 1.0
    return Sm, Sp


def _tile_channels(vec, W):
    return np.tile(np.asarray(vec, np.float32), W)   # lane w*C + c <- vec[c]


def pack_params(params, N, C, H, W):
    K1a, b1a, KA0a, Mma, Mpa, b2a = _fold_fire(params["f1"], W, C)
    K1b, b1b, KA0b, Mmb, Mpb, b2b = _fold_fire(params["f2"], W, C)
    wk = np.stack([K1a, KA0a, Mma, Mpa, K1b, KA0b, Mmb, Mpb], axis=0)  # (8,WC,WC)
    Sm, Sp = _shift_mats(N, H)
    shift = np.stack([Sm, Sp], axis=0)                                  # (2,NH,NH)
    vecs = np.stack([
        b1a, b2a, b1b, b2b,
        _tile_channels(params["bb_bn1s"], W), _tile_channels(params["bb_bn1b"], W),
        _tile_channels(params["bb_bn2s"], W), _tile_channels(params["bb_bn2b"], W),
    ], axis=0)                                                          # (8, WC)
    return dict(wk=jnp.asarray(wk), shift=jnp.asarray(shift), vecs=jnp.asarray(vecs))


# --------------------------------- params ------------------------------------


def make_bn(key, c):
    k1, k2, k3, k4 = jax.random.split(key, 4)
    gamma = 1.0 + 0.1 * jax.random.normal(k1, (c,), jnp.float32)
    beta = 0.1 * jax.random.normal(k2, (c,), jnp.float32)
    mean = 0.1 * jax.random.normal(k3, (c,), jnp.float32)
    var = jax.random.uniform(k4, (c,), jnp.float32, minval=0.5, maxval=1.5)
    scale = gamma / jnp.sqrt(var + BN_EPS)
    bias = beta - mean * scale
    return scale, bias


def make_fire_params(key, cin, cout, sr=2):
    cm = cout // sr
    k1, k2, k3, k4, k5 = jax.random.split(key, 5)
    w1 = 0.2 * jax.random.normal(k1, (cin, cm), jnp.float32)          # conv1 (1x1)
    bn1s, bn1b = make_bn(k2, cm)
    wa = 0.2 * jax.random.normal(k3, (cm, cout // 2), jnp.float32)    # conv_1x1
    wd = 0.2 * jax.random.normal(k4, (3, 3, cm), jnp.float32)         # conv_3x3 (dw)
    bn2s, bn2b = make_bn(k5, cout)
    return dict(w1=w1, bn1s=bn1s, bn1b=bn1b, wa=wa, wd=wd, bn2s=bn2s, bn2b=bn2b)


# --------------------------- pure-JAX reference -------------------------------


def fire_ref(x, p):
    cm = p["w1"].shape[1]
    y1 = jnp.einsum("nhwc,cm->nhwm", x, p["w1"])
    y1 = y1 * p["bn1s"] + p["bn1b"]
    a = jnp.einsum("nhwc,cm->nhwm", y1, p["wa"])
    d = lax.conv_general_dilated(
        y1, p["wd"][:, :, None, :], window_strides=(1, 1), padding="SAME",
        dimension_numbers=("NHWC", "HWIO", "NHWC"), feature_group_count=cm)
    out = jnp.concatenate([a, d], axis=-1)
    out = out * p["bn2s"] + p["bn2b"]
    return jax.nn.relu(out + x)


def basic_block_ref(x_nchw, params):
    x = jnp.transpose(x_nchw, (0, 2, 3, 1))
    h = fire_ref(x, params["f1"])
    h = jax.nn.relu(h * params["bb_bn1s"] + params["bb_bn1b"])
    h = fire_ref(h, params["f2"])
    h = h * params["bb_bn2s"] + params["bb_bn2b"]
    return jnp.transpose(jax.nn.relu(h + x), (0, 3, 1, 2))


# ----------------------------------- main -------------------------------------


if __name__ == "__main__":
    # BasicBlock(inplanes=8, planes=8, stride=1, downsample=None); W*C = 128.
    N, C, H, W = 2, 8, 16, 16
    key = jax.random.PRNGKey(0)
    kx, kf1, kb1, kf2, kb2 = jax.random.split(key, 5)

    params = {
        "f1": make_fire_params(kf1, C, C),
        "f2": make_fire_params(kf2, C, C),
    }
    params["bb_bn1s"], params["bb_bn1b"] = make_bn(kb1, C)
    params["bb_bn2s"], params["bb_bn2b"] = make_bn(kb2, C)

    x = jax.random.normal(kx, (N, C, H, W), jnp.float32)   # PyTorch NCHW input

    packed = pack_params(params, N, C, H, W)
    out = jax.block_until_ready(basic_block_pallas(x, packed))

    ref = basic_block_ref(x, params)
    assert out.shape == (N, C, H, W)
    err = float(jnp.max(jnp.abs(out - ref)))
    ref_max = max(1.0, float(jnp.max(jnp.abs(ref))))
    # default (single-pass bf16) MXU precision vs f32 reference -> ~1% relative
    assert err <= 2e-2 * ref_max, f"max abs err {err} (ref max {ref_max})"
    print("KERNEL_OK")
</pallas_src>

<mosaic_0001>
module attributes {stable_mosaic.version = 11 : i64} {
  func.func @basic_block_kernel(%arg0: memref<32x128xf32, #tpu.memory_space<vmem>>, %arg1: memref<8x128x128xf32, #tpu.memory_space<vmem>>, %arg2: memref<2x32x32xf32, #tpu.memory_space<vmem>>, %arg3: memref<8x128xf32, #tpu.memory_space<vmem>>, %arg4: memref<32x128xf32, #tpu.memory_space<vmem>>) attributes {dimension_semantics = [], scalar_prefetch = 0 : i64, scratch_operands = 0 : i64, tpu.core_type = #tpu.core_type<tc>} {
    %c0 = arith.constant 0 : index
    %c0_0 = arith.constant 0 : index
    %0 = vector.load %arg0[%c0, %c0_0] : memref<32x128xf32, #tpu.memory_space<vmem>>, vector<32x128xf32>
    %c0_1 = arith.constant 0 : index
    %c0_2 = arith.constant 0 : index
    %c0_3 = arith.constant 0 : index
    %1 = vector.load %arg2[%c0_1, %c0_2, %c0_3] : memref<2x32x32xf32, #tpu.memory_space<vmem>>, vector<1x32x32xf32>
    %2 = vector.shape_cast %1 : vector<1x32x32xf32> to vector<32x32xf32>
    %c1 = arith.constant 1 : index
    %c0_4 = arith.constant 0 : index
    %c0_5 = arith.constant 0 : index
    %3 = vector.load %arg2[%c1, %c0_4, %c0_5] : memref<2x32x32xf32, #tpu.memory_space<vmem>>, vector<1x32x32xf32>
    %4 = vector.shape_cast %3 : vector<1x32x32xf32> to vector<32x32xf32>
    %c0_6 = arith.constant 0 : index
    %c0_7 = arith.constant 0 : index
    %5 = vector.load %arg3[%c0_6, %c0_7] : memref<8x128xf32, #tpu.memory_space<vmem>>, vector<8x128xf32>
    %6 = vector.extract_strided_slice %5 {offsets = [0, 0], sizes = [1, 128], strides = [1, 1]} : vector<8x128xf32> to vector<1x128xf32>
    %7 = vector.extract_strided_slice %5 {offsets = [1, 0], sizes = [1, 128], strides = [1, 1]} : vector<8x128xf32> to vector<1x128xf32>
    %c0_8 = arith.constant 0 : index
    %c0_9 = arith.constant 0 : index
    %c0_10 = arith.constant 0 : index
    %8 = vector.load %arg1[%c0_8, %c0_9, %c0_10] : memref<8x128x128xf32, #tpu.memory_space<vmem>>, vector<1x128x128xf32>
    %9 = vector.shape_cast %8 : vector<1x128x128xf32> to vector<128x128xf32>
    %cst = arith.constant dense<0.000000e+00> : vector<32x128xf32>
    %10 = tpu.matmul %0, %9, %cst {dimension_numbers = #tpu.dot_dimension_numbers<[1], [0], [0], [1], [0, 0, 1, 1], [], []>} : vector<32x128xf32>, vector<128x128xf32>, vector<32x128xf32> -> vector<32x128xf32>
    %11 = vector.broadcast %6 : vector<1x128xf32> to vector<32x128xf32>
    %12 = arith.addf %10, %11 : vector<32x128xf32>
    %c1_11 = arith.constant 1 : index
    %c0_12 = arith.constant 0 : index
    %c0_13 = arith.constant 0 : index
    %13 = vector.load %arg1[%c1_11, %c0_12, %c0_13] : memref<8x128x128xf32, #tpu.memory_space<vmem>>, vector<1x128x128xf32>
    %14 = vector.shape_cast %13 : vector<1x128x128xf32> to vector<128x128xf32>
    %cst_14 = arith.constant dense<0.000000e+00> : vector<32x128xf32>
    %15 = tpu.matmul %12, %14, %cst_14 {dimension_numbers = #tpu.dot_dimension_numbers<[1], [0], [0], [1], [0, 0, 1, 1], [], []>} : vector<32x128xf32>, vector<128x128xf32>, vector<32x128xf32> -> vector<32x128xf32>
    %c2 = arith.constant 2 : index
    %c0_15 = arith.constant 0 : index
    %c0_16 = arith.constant 0 : index
    %16 = vector.load %arg1[%c2, %c0_15, %c0_16] : memref<8x128x128xf32, #tpu.memory_space<vmem>>, vector<1x128x128xf32>
    %17 = vector.shape_cast %16 : vector<1x128x128xf32> to vector<128x128xf32>
    %cst_17 = arith.constant dense<0.000000e+00> : vector<32x128xf32>
    %18 = tpu.matmul %12, %17, %cst_17 {dimension_numbers = #tpu.dot_dimension_numbers<[1], [0], [0], [1], [0, 0, 1, 1], [], []>} : vector<32x128xf32>, vector<128x128xf32>, vector<32x128xf32> -> vector<32x128xf32>
    %c3 = arith.constant 3 : index
    %c0_18 = arith.constant 0 : index
    %c0_19 = arith.constant 0 : index
    %19 = vector.load %arg1[%c3, %c0_18, %c0_19] : memref<8x128x128xf32, #tpu.memory_space<vmem>>, vector<1x128x128xf32>
    %20 = vector.shape_cast %19 : vector<1x128x128xf32> to vector<128x128xf32>
    %cst_20 = arith.constant dense<0.000000e+00> : vector<32x128xf32>
    %21 = tpu.matmul %12, %20, %cst_20 {dimension_numbers = #tpu.dot_dimension_numbers<[1], [0], [0], [1], [0, 0, 1, 1], [], []>} : vector<32x128xf32>, vector<128x128xf32>, vector<32x128xf32> -> vector<32x128xf32>
    %cst_21 = arith.constant dense<0.000000e+00> : vector<32x128xf32>
    %22 = tpu.matmul %2, %18, %cst_21 {dimension_numbers = #tpu.dot_dimension_numbers<[1], [0], [0], [1], [0, 0, 1, 1], [], []>} : vector<32x32xf32>, vector<32x128xf32>, vector<32x128xf32> -> vector<32x128xf32>
    %23 = arith.addf %15, %22 : vector<32x128xf32>
    %cst_22 = arith.constant dense<0.000000e+00> : vector<32x128xf32>
    %24 = tpu.matmul %4, %21, %cst_22 {dimension_numbers = #tpu.dot_dimension_numbers<[1], [0], [0], [1], [0, 0, 1, 1], [], []>} : vector<32x32xf32>, vector<32x128xf32>, vector<32x128xf32> -> vector<32x128xf32>
    %25 = arith.addf %23, %24 : vector<32x128xf32>
    %26 = vector.broadcast %7 : vector<1x128xf32> to vector<32x128xf32>
    %27 = arith.addf %25, %26 : vector<32x128xf32>
    %28 = arith.addf %27, %0 : vector<32x128xf32>
    %cst_23 = arith.constant 0.000000e+00 : f32
    %29 = vector.broadcast %cst_23 : f32 to vector<32x128xf32>
    %30 = arith.maximumf %28, %29 : vector<32x128xf32>
    %31 = vector.extract_strided_slice %5 {offsets = [4, 0], sizes = [1, 128], strides = [1, 1]} : vector<8x128xf32> to vector<1x128xf32>
    %32 = vector.broadcast %31 : vector<1x128xf32> to vector<32x128xf32>
    %33 = arith.mulf %30, %32 : vector<32x128xf32>
    %34 = vector.extract_strided_slice %5 {offsets = [5, 0], sizes = [1, 128], strides = [1, 1]} : vector<8x128xf32> to vector<1x128xf32>
    %35 = vector.broadcast %34 : vector<1x128xf32> to vector<32x128xf32>
    %36 = arith.addf %33, %35 : vector<32x128xf32>
    %cst_24 = arith.constant 0.000000e+00 : f32
    %37 = vector.broadcast %cst_24 : f32 to vector<32x128xf32>
    %38 = arith.maximumf %36, %37 : vector<32x128xf32>
    %39 = vector.extract_strided_slice %5 {offsets = [2, 0], sizes = [1, 128], strides = [1, 1]} : vector<8x128xf32> to vector<1x128xf32>
    %40 = vector.extract_strided_slice %5 {offsets = [3, 0], sizes = [1, 128], strides = [1, 1]} : vector<8x128xf32> to vector<1x128xf32>
    %c4 = arith.constant 4 : index
    %c0_25 = arith.constant 0 : index
    %c0_26 = arith.constant 0 : index
    %41 = vector.load %arg1[%c4, %c0_25, %c0_26] : memref<8x128x128xf32, #tpu.memory_space<vmem>>, vector<1x128x128xf32>
    %42 = vector.shape_cast %41 : vector<1x128x128xf32> to vector<128x128xf32>
    %cst_27 = arith.constant dense<0.000000e+00> : vector<32x128xf32>
    %43 = tpu.matmul %38, %42, %cst_27 {dimension_numbers = #tpu.dot_dimension_numbers<[1], [0], [0], [1], [0, 0, 1, 1], [], []>} : vector<32x128xf32>, vector<128x128xf32>, vector<32x128xf32> -> vector<32x128xf32>
    %44 = vector.broadcast %39 : vector<1x128xf32> to vector<32x128xf32>
    %45 = arith.addf %43, %44 : vector<32x128xf32>
    %c5 = arith.constant 5 : index
    %c0_28 = arith.constant 0 : index
    %c0_29 = arith.constant 0 : index
    %46 = vector.load %arg1[%c5, %c0_28, %c0_29] : memref<8x128x128xf32, #tpu.memory_space<vmem>>, vector<1x128x128xf32>
    %47 = vector.shape_cast %46 : vector<1x128x128xf32> to vector<128x128xf32>
    %cst_30 = arith.constant dense<0.000000e+00> : vector<32x128xf32>
    %48 = tpu.matmul %45, %47, %cst_30 {dimension_numbers = #tpu.dot_dimension_numbers<[1], [0], [0], [1], [0, 0, 1, 1], [], []>} : vector<32x128xf32>, vector<128x128xf32>, vector<32x128xf32> -> vector<32x128xf32>
    %c6 = arith.constant 6 : index
    %c0_31 = arith.constant 0 : index
    %c0_32 = arith.constant 0 : index
    %49 = vector.load %arg1[%c6, %c0_31, %c0_32] : memref<8x128x128xf32, #tpu.memory_space<vmem>>, vector<1x128x128xf32>
    %50 = vector.shape_cast %49 : vector<1x128x128xf32> to vector<128x128xf32>
    %cst_33 = arith.constant dense<0.000000e+00> : vector<32x128xf32>
    %51 = tpu.matmul %45, %50, %cst_33 {dimension_numbers = #tpu.dot_dimension_numbers<[1], [0], [0], [1], [0, 0, 1, 1], [], []>} : vector<32x128xf32>, vector<128x128xf32>, vector<32x128xf32> -> vector<32x128xf32>
    %c7 = arith.constant 7 : index
    %c0_34 = arith.constant 0 : index
    %c0_35 = arith.constant 0 : index
    %52 = vector.load %arg1[%c7, %c0_34, %c0_35] : memref<8x128x128xf32, #tpu.memory_space<vmem>>, vector<1x128x128xf32>
    %53 = vector.shape_cast %52 : vector<1x128x128xf32> to vector<128x128xf32>
    %cst_36 = arith.constant dense<0.000000e+00> : vector<32x128xf32>
    %54 = tpu.matmul %45, %53, %cst_36 {dimension_numbers = #tpu.dot_dimension_numbers<[1], [0], [0], [1], [0, 0, 1, 1], [], []>} : vector<32x128xf32>, vector<128x128xf32>, vector<32x128xf32> -> vector<32x128xf32>
    %cst_37 = arith.constant dense<0.000000e+00> : vector<32x128xf32>
    %55 = tpu.matmul %2, %51, %cst_37 {dimension_numbers = #tpu.dot_dimension_numbers<[1], [0], [0], [1], [0, 0, 1, 1], [], []>} : vector<32x32xf32>, vector<32x128xf32>, vector<32x128xf32> -> vector<32x128xf32>
    %56 = arith.addf %48, %55 : vector<32x128xf32>
    %cst_38 = arith.constant dense<0.000000e+00> : vector<32x128xf32>
    %57 = tpu.matmul %4, %54, %cst_38 {dimension_numbers = #tpu.dot_dimension_numbers<[1], [0], [0], [1], [0, 0, 1, 1], [], []>} : vector<32x32xf32>, vector<32x128xf32>, vector<32x128xf32> -> vector<32x128xf32>
    %58 = arith.addf %56, %57 : vector<32x128xf32>
    %59 = vector.broadcast %40 : vector<1x128xf32> to vector<32x128xf32>
    %60 = arith.addf %58, %59 : vector<32x128xf32>
    %61 = arith.addf %60, %38 : vector<32x128xf32>
    %cst_39 = arith.constant 0.000000e+00 : f32
    %62 = vector.broadcast %cst_39 : f32 to vector<32x128xf32>
    %63 = arith.maximumf %61, %62 : vector<32x128xf32>
    %64 = vector.extract_strided_slice %5 {offsets = [6, 0], sizes = [1, 128], strides = [1, 1]} : vector<8x128xf32> to vector<1x128xf32>
    %65 = vector.broadcast %64 : vector<1x128xf32> to vector<32x128xf32>
    %66 = arith.mulf %63, %65 : vector<32x128xf32>
    %67 = vector.extract_strided_slice %5 {offsets = [7, 0], sizes = [1, 128], strides = [1, 1]} : vector<8x128xf32> to vector<1x128xf32>
    %68 = vector.broadcast %67 : vector<1x128xf32> to vector<32x128xf32>
    %69 = arith.addf %66, %68 : vector<32x128xf32>
    %70 = arith.addf %69, %0 : vector<32x128xf32>
    %cst_40 = arith.constant 0.000000e+00 : f32
    %71 = vector.broadcast %cst_40 : f32 to vector<32x128xf32>
    %72 = arith.maximumf %70, %71 : vector<32x128xf32>
    %c0_41 = arith.constant 0 : index
    %c0_42 = arith.constant 0 : index
    %73 = vector.load %arg4[%c0_41, %c0_42] : memref<32x128xf32, #tpu.memory_space<vmem>>, vector<32x128xf32>
    tpu.vector_store %arg4[%c0_41, %c0_42], %72 {strides = array<i32>} : memref<32x128xf32, #tpu.memory_space<vmem>>, vector<32x128xf32>,
    return
  }
}

</mosaic_0001>

<bundles_post_ra>
// kernel: basic_block_pallas.1
= control target key start
LH: loop header
LB: loop body
LE: loop exit
PB: predicated region body
PF: predicated region fallthrough
CT: control target
= control target key end

     0   :  { %9 = vsyncpa [#allocation3], 0  ;;  %s2035_s15 = smov [#allocation2]   ;;  %s2640_s0 = inlined_call_operand.vmem [shape: f32[32,128], index: 0, kind: input, shape index: {}]   ;;  %s2641_s1 = inlined_call_operand.vmem [shape: f32[8,128,128], index: 1, kind: input, shape index: {}]   ;;  %s2642_s2 = inlined_call_operand.hbm [shape: f32[2,32,32], index: 2, kind: input, shape index: {}]   ;;  %s2643_s3 = inlined_call_operand.vmem [shape: f32[8,128], index: 3, kind: input, shape index: {}]   ;;  %s2644_s4 = inlined_call_operand.vmem [shape: f32[32,128], index: 4, kind: output, shape index: {}]  }
   0x1   :  { %s19_s16 = sshll.u32 %s2035_s15, 4  ;;  %s20_s16 = int_to_ptr.vmem [resolvable:$true] %s19_s16 }
   0x2   :  { %s2021_s17 = scalar_lea.vmem %s20_s16, 1024  ;;  %p2026_p1 = scmp.lt.s32.totalorder %s20_s16, %s20_s16 }
   0x3   :  { %p2022_p0 = scmp.ne.s32.totalorder %s20_s16, %s2021_s17  ;;  %p2027_p2 = scmp.lt.s32.totalorder %s2021_s17, %s2021_s17 }
   0x5   :  { %p2028_p3 = por %p2027_p2, %p2026_p1 }
   0x7   :  { %p2029_p4 = pnand %p2028_p3, %p2022_p0 }
   0x9   :  { %2032 = shalt.err (!%p2029_p4)
}
   0xa   :  { %s2036_s18 = smov 128   ;;  %s2037_s19 = smov 8  }
   0xb   :  { %25 = dma.hbm_to_vmem [thread:$0]  %s2642_s2, 1024, %s20_s16, [#allocation3], %s2036_s18, %s2036_s18, %s2037_s19  }
   0xc   :  { %2033 = dma.done.wait [#allocation3], 1024  }
   0xd   :  { %2034 = vsyncadd [#allocation3], 4294966272  ;;  %v60_v0 = vld [vmem:[%s2641_s1 + $0x78] sm:$0xff]  ;;  %v59_v1 = vld [vmem:[%s2641_s1 + $0x70] sm:$0xff]  ;;  %v61_v52 = vlaneseq  ;;  %vm371_vm0 = vcmask 261120  }
   0xe   :  { %1646 = vmatprep.subr.mxu0 %v60_v0  ;;  %v58_v2 = vld [vmem:[%s2641_s1 + $0x68] sm:$0xff]  ;;  %v57_v3 = vld [vmem:[%s2641_s1 + $0x60] sm:$0xff]  ;;  %v56_v5 = vld [vmem:[%s2641_s1 + $0x58] sm:$0xff] }
   0xf   :  { %1647 = vmatpush3.msra.mxu0 %v60_v0  ;;  %v2081_v4 = vld [vmem:[%s2640_s0] sm:$0xff]  ;;  %v1357_v6 = vld [vmem:[%s2641_s1 + $0x178] sm:$0xff]  ;;  %v1356_v7 = vld [vmem:[%s2641_s1 + $0x170] sm:$0xff]  ;;  %v2234_v53 = vshrl.u32 %v61_v52, 7 }
  0x10   :  { %1648 = vmatprep.subr.mxu0 %v59_v1  ;;  %1678 = vmatprep.mubr.f32.mxu0 %v2081_v4  ;;  %v55_v8 = vld [vmem:[%s2641_s1 + $0x50] sm:$0xff]  ;;  %v1355_v9 = vld [vmem:[%s2641_s1 + $0x168] sm:$0xff]  ;;  %v1354_v11 = vld [vmem:[%s2641_s1 + $0x160] sm:$0xff] }
  0x11   :  { %1649 = vmatpush3.msra.mxu0 %v59_v1  ;;  %1684 = vmatprep.subr.mxu1 %v1357_v6  ;;  %v54_v10 = vld [vmem:[%s2641_s1 + $0x48] sm:$0xff]  ;;  %v53_v12 = vld [vmem:[%s2641_s1 + $0x40] sm:$0xff]  ;;  %v1353_v13 = vld [vmem:[%s2641_s1 + $0x158] sm:$0xff]  ;;  %v63_v54 = vsub.s32 0, %v2234_v53 }
  0x12   :  { %1650 = vmatprep.subr.mxu0 %v58_v2  ;;  %1685 = vmatpush3.msra.mxu1 %v1357_v6  ;;  %v52_v14 = vld [vmem:[%s2641_s1 + $0x38] sm:$0xff]  ;;  %v1352_v15 = vld [vmem:[%s2641_s1 + $0x150] sm:$0xff]  ;;  %v1351_v17 = vld [vmem:[%s2641_s1 + $0x148] sm:$0xff] }
  0x13   :  { %1651 = vmatpush3.msra.mxu0 %v58_v2  ;;  %1686 = vmatprep.subr.mxu1 %v1356_v7  ;;  %v51_v16 = vld [vmem:[%s2641_s1 + $0x30] sm:$0xff]  ;;  %v50_v18 = vld [vmem:[%s2641_s1 + $0x28] sm:$0xff]  ;;  %v1350_v19 = vld [vmem:[%s2641_s1 + $0x140] sm:$0xff] }
  0x14   :  { %1652 = vmatprep.subr.mxu0 %v57_v3  ;;  %1687 = vmatpush3.msra.mxu1 %v1356_v7  ;;  %v49_v20 = vld [vmem:[%s2641_s1 + $0x20] sm:$0xff]  ;;  %v1349_v21 = vld [vmem:[%s2641_s1 + $0x138] sm:$0xff]  ;;  %v1348_v23 = vld [vmem:[%s2641_s1 + $0x130] sm:$0xff] }
  0x15   :  { %1653 = vmatpush3.msra.mxu0 %v57_v3  ;;  %1688 = vmatprep.subr.mxu1 %v1355_v9  ;;  %v48_v22 = vld [vmem:[%s2641_s1 + $0x18] sm:$0xff]  ;;  %v47_v24 = vld [vmem:[%s2641_s1 + $0x10] sm:$0xff]  ;;  %v1347_v25 = vld [vmem:[%s2641_s1 + $0x128] sm:$0xff] }
  0x16   :  { %1654 = vmatprep.subr.mxu0 %v56_v5  ;;  %1689 = vmatpush3.msra.mxu1 %v1355_v9  ;;  %v46_v26 = vld [vmem:[%s2641_s1 + $0x8] sm:$0xff]  ;;  %v1346_v27 = vld [vmem:[%s2641_s1 + $0x120] sm:$0xff]  ;;  %v1345_v29 = vld [vmem:[%s2641_s1 + $0x118] sm:$0xff] }
  0x17   :  { %1655 = vmatpush3.msra.mxu0 %v56_v5  ;;  %1690 = vmatprep.subr.mxu1 %v1354_v11  ;;  %v45_v28 = vld [vmem:[%s2641_s1] sm:$0xff]  ;;  %v2162_v30 = vld [vmem:[%s2640_s0 + $0x8] sm:$0xff]  ;;  %v1373_v31 = vld [vmem:[%s2641_s1 + $0x1f8] sm:$0xff] }
  0x18   :  { %1656 = vmatprep.subr.mxu0 %v55_v8  ;;  %1691 = vmatpush3.msra.mxu1 %v1354_v11  ;;  %v2170_v32 = vld [vmem:[%s2640_s0 + $0x10] sm:$0xff]  ;;  %v2180_v34 = vld [vmem:[%s2640_s0 + $0x18] sm:$0xff]  ;;  %v1371_v35 = vld [vmem:[%s2641_s1 + $0x1e8] sm:$0xff] }
  0x19   :  { %1657 = vmatpush3.msra.mxu0 %v55_v8  ;;  %1692 = vmatprep.subr.mxu1 %v1353_v13  ;;  %v1372_v33 = vld [vmem:[%s2641_s1 + $0x1f0] sm:$0xff]  ;;  %v1370_v36 = vld [vmem:[%s2641_s1 + $0x1e0] sm:$0xff]  ;;  %v1369_v37 = vld [vmem:[%s2641_s1 + $0x1d8] sm:$0xff] }
  0x1a   :  { %1658 = vmatprep.subr.mxu0 %v54_v10  ;;  %1693 = vmatpush3.msra.mxu1 %v1353_v13  ;;  %v1368_v38 = vld [vmem:[%s2641_s1 + $0x1d0] sm:$0xff]  ;;  %v1367_v39 = vld [vmem:[%s2641_s1 + $0x1c8] sm:$0xff]  ;;  %v1366_v40 = vld [vmem:[%s2641_s1 + $0x1c0] sm:$0xff] }
  0x1b   :  { %1659 = vmatpush3.msra.mxu0 %v54_v10  ;;  %1694 = vmatprep.subr.mxu1 %v1352_v15  ;;  %v1365_v41 = vld [vmem:[%s2641_s1 + $0x1b8] sm:$0xff]  ;;  %v1364_v42 = vld [vmem:[%s2641_s1 + $0x1b0] sm:$0xff]  ;;  %v1363_v43 = vld [vmem:[%s2641_s1 + $0x1a8] sm:$0xff] }
  0x1c   :  { %1660 = vmatprep.subr.mxu0 %v53_v12  ;;  %1695 = vmatpush3.msra.mxu1 %v1352_v15  ;;  %v1362_v44 = vld [vmem:[%s2641_s1 + $0x1a0] sm:$0xff]  ;;  %v1361_v45 = vld [vmem:[%s2641_s1 + $0x198] sm:$0xff]  ;;  %v1344_v46 = vld [vmem:[%s2641_s1 + $0x110] sm:$0xff] }
  0x1d   :  { %1661 = vmatpush3.msra.mxu0 %v53_v12  ;;  %1696 = vmatprep.subr.mxu1 %v1351_v17  ;;  %v1360_v47 = vld [vmem:[%s2641_s1 + $0x190] sm:$0xff]  ;;  %v1343_v48 = vld [vmem:[%s2641_s1 + $0x108] sm:$0xff]  ;;  %v1342_v50 = vld [vmem:[%s2641_s1 + $0x100] sm:$0xff] }
  0x1e   :  { %1662 = vmatprep.subr.mxu0 %v52_v14  ;;  %1697 = vmatpush3.msra.mxu1 %v1351_v17  ;;  %v1359_v49 = vld [vmem:[%s2641_s1 + $0x188] sm:$0xff]  ;;  %v1358_v51 = vld [vmem:[%s2641_s1 + $0x180] sm:$0xff]  ;;  %v1341_v13 = vld [vmem:[%s2641_s1 + $0xf8] sm:$0xff] }
  0x1f   :  { %1663 = vmatpush3.msra.mxu0 %v52_v14  ;;  %1698 = vmatprep.subr.mxu1 %v1350_v19  ;;  %v2240_v55 = vld [vmem:[%s2643_s3] sm:$0xff]  ;;  %v2267_v12 = vld [vmem:[#allocation2 + $0x8] sm:$0xff]  ;;  %v2272_v14 = vld [vmem:[#allocation2 + $0x10] sm:$0xff] }
  0x20   :  { %1664 = vmatprep.subr.mxu0 %v51_v16  ;;  %1699 = vmatpush3.msra.mxu1 %v1350_v19  ;;  %v64_v56 = vrot.slane %v2240_v55, %v63_v54  ;;  %v2259_v1 = vld [vmem:[#allocation2] sm:$0xff]  ;;  %v1340_v15 = vld [vmem:[%s2641_s1 + $0xf0] sm:$0xff]  ;;  %v1339_v19 = vld [vmem:[%s2641_s1 + $0xe8] sm:$0xff] }
  0x21   :  { %1665 = vmatpush3.msra.mxu0 %v51_v16  ;;  %1700 = vmatprep.subr.mxu1 %v1349_v21  ;;  %v2263_v2 = vld [vmem:[#allocation2 + $0x20] sm:$0xff]  ;;  %v2277_v16 = vld [vmem:[#allocation2 + $0x28] sm:$0xff]  ;;  %v2281_v17 = vld [vmem:[#allocation2 + $0x30] sm:$0xff] }
  0x22   :  { %1666 = vmatprep.subr.mxu0 %v50_v18  ;;  %1701 = vmatpush3.msra.mxu1 %v1349_v21  ;;  %v2297_v21 = vld [vmem:[#allocation2 + $0x38] sm:$0xff]  ;;  %v1382_v52 = vld [vmem:[%s2641_s1 + $0x200] sm:$0xff] }
  0x23   :  { %1667 = vmatpush3.msra.mxu0 %v50_v18  ;;  %1702 = vmatprep.subr.mxu1 %v1348_v23  ;;  %v2285_v18 = vld [vmem:[#allocation2 + $0x18] sm:$0xff] }
  0x24   :  { %1668 = vmatprep.subr.mxu0 %v49_v20  ;;  %1703 = vmatpush3.msra.mxu1 %v1348_v23  ;;  %v1336_v23 = vld [vmem:[%s2641_s1 + $0xd0] sm:$0xff]  ;;  %v1429_v54 = vld [vmem:[%s2641_s1 + $0x378] sm:$0xff] }
  0x25   :  { %1669 = vmatpush3.msra.mxu0 %v49_v20  ;;  %1704 = vmatprep.subr.mxu1 %v1347_v25  ;;  %v1338_v20 = vld [vmem:[%s2641_s1 + $0xe0] sm:$0xff] }
  0x26   :  { %1670 = vmatprep.subr.mxu0 %v48_v22  ;;  %1705 = vmatpush3.msra.mxu1 %v1347_v25  ;;  %v1334_v25 = vld [vmem:[%s2641_s1 + $0xc0] sm:$0xff] }
  0x27   :  { %1671 = vmatpush3.msra.mxu0 %v48_v22  ;;  %1706 = vmatprep.subr.mxu1 %v1346_v27  ;;  %v1337_v22 = vld [vmem:[%s2641_s1 + $0xd8] sm:$0xff] }
  0x28   :  { %1672 = vmatprep.subr.mxu0 %v47_v24  ;;  %1707 = vmatpush3.msra.mxu1 %v1346_v27  ;;  %v1332_v27 = vld [vmem:[%s2641_s1 + $0xb0] sm:$0xff] }
  0x29   :  { %1673 = vmatpush3.msra.mxu0 %v47_v24  ;;  %1708 = vmatprep.subr.mxu1 %v1345_v29  ;;  %v1335_v24 = vld [vmem:[%s2641_s1 + $0xc8] sm:$0xff] }
  0x2a   :  { %1674 = vmatprep.subr.mxu0 %v46_v26  ;;  %1709 = vmatpush3.msra.mxu1 %v1345_v29  ;;  %v1330_v29 = vld [vmem:[%s2641_s1 + $0xa0] sm:$0xff] }
  0x2b   :  { %1675 = vmatpush3.msra.mxu0 %v46_v26  ;;  %1710 = vmatprep.subr.mxu1 %v1344_v46  ;;  %v1333_v26 = vld [vmem:[%s2641_s1 + $0xb8] sm:$0xff] }
  0x2c   :  { %1676 = vmatprep.subr.mxu0 %v45_v28  ;;  %1711 = vmatpush3.msra.mxu1 %v1344_v46  ;;  %v1388_v46 = vld [vmem:[%s2641_s1 + $0x230] sm:$0xff] }
  0x2d   :  { %1677 = vmatpush3.msra.mxu0 %v45_v28  ;;  %1712 = vmatprep.subr.mxu1 %v1343_v48  ;;  %v1331_v28 = vld [vmem:[%s2641_s1 + $0xa8] sm:$0xff] }
  0x2e   :  { %1679 = vmatmul.mubr.f32.vlgmr.msra.gmra.mxu0 %v2162_v30  ;;  %1722 = vmatprep.subr.mxu0 %v1373_v31 }
  0x2f   :  { %1681 = vmatprep.mubr.f32.mxu0 %v2170_v32  ;;  %1723 = vmatpush3.msra.mxu0 %v1373_v31  ;;  %v1329_v31 = vld [vmem:[%s2641_s1 + $0x98] sm:$0xff] }
  0x30   :  { %1724 = vmatprep.subr.mxu0 %v1372_v33  ;;  %1713 = vmatpush3.msra.mxu1 %v1343_v48  ;;  %v1386_v48 = vld [vmem:[%s2641_s1 + $0x220] sm:$0xff] }
  0x31   :  { %1725 = vmatpush3.msra.mxu0 %v1372_v33  ;;  %1714 = vmatprep.subr.mxu1 %v1342_v50  ;;  %v1328_v33 = vld [vmem:[%s2641_s1 + $0x90] sm:$0xff] }
  0x32   :  { %1682 = vmatmul.mubr.f32.gmra.mxu0 %v2180_v34  ;;  %1726 = vmatprep.subr.mxu0 %v1371_v35 }
  0x33   :  { %1727 = vmatpush3.msra.mxu0 %v1371_v35  ;;  %1715 = vmatpush3.msra.mxu1 %v1342_v50  ;;  %v1327_v35 = vld [vmem:[%s2641_s1 + $0x88] sm:$0xff]  ;;  %v1384_v50 = vld [vmem:[%s2641_s1 + $0x210] sm:$0xff] }
  0x34   :  { %1728 = vmatprep.subr.mxu0 %v1370_v36 }
  0x35   :  { %1729 = vmatpush3.msra.mxu0 %v1370_v36  ;;  %v1326_v36 = vld [vmem:[%s2641_s1 + $0x80] sm:$0xff] }
  0x36   :  { %1730 = vmatprep.subr.mxu0 %v1369_v37 }
  0x37   :  { %1731 = vmatpush3.msra.mxu0 %v1369_v37  ;;  %v1397_v37 = vld [vmem:[%s2641_s1 + $0x278] sm:$0xff] }
  0x38   :  { %1732 = vmatprep.subr.mxu0 %v1368_v38 }
  0x39   :  { %1733 = vmatpush3.msra.mxu0 %v1368_v38  ;;  %v1396_v38 = vld [vmem:[%s2641_s1 + $0x270] sm:$0xff] }
  0x3a   :  { %1734 = vmatprep.subr.mxu0 %v1367_v39 }
  0x3b   :  { %1735 = vmatpush3.msra.mxu0 %v1367_v39  ;;  %v1395_v39 = vld [vmem:[%s2641_s1 + $0x268] sm:$0xff] }
  0x3c   :  { %1736 = vmatprep.subr.mxu0 %v1366_v40 }
  0x3d   :  { %1737 = vmatpush3.msra.mxu0 %v1366_v40  ;;  %v1394_v40 = vld [vmem:[%s2641_s1 + $0x260] sm:$0xff] }
  0x3e   :  { %1738 = vmatprep.subr.mxu0 %v1365_v41 }
  0x3f   :  { %1739 = vmatpush3.msra.mxu0 %v1365_v41  ;;  %v1393_v41 = vld [vmem:[%s2641_s1 + $0x258] sm:$0xff] }
  0x40   :  { %1740 = vmatprep.subr.mxu0 %v1364_v42 }
  0x41   :  { %1741 = vmatpush3.msra.mxu0 %v1364_v42  ;;  %v1392_v42 = vld [vmem:[%s2641_s1 + $0x250] sm:$0xff] }
  0x42   :  { %1742 = vmatprep.subr.mxu0 %v1363_v43 }
  0x43   :  { %1743 = vmatpush3.msra.mxu0 %v1363_v43  ;;  %v1391_v43 = vld [vmem:[%s2641_s1 + $0x248] sm:$0xff] }
  0x44   :  { %1744 = vmatprep.subr.mxu0 %v1362_v44 }
  0x45   :  { %1745 = vmatpush3.msra.mxu0 %v1362_v44  ;;  %v1390_v44 = vld [vmem:[%s2641_s1 + $0x240] sm:$0xff] }
  0x46   :  { %1746 = vmatprep.subr.mxu0 %v1361_v45 }
  0x47   :  { %1747 = vmatpush3.msra.mxu0 %v1361_v45  ;;  %v1389_v45 = vld [vmem:[%s2641_s1 + $0x238] sm:$0xff] }
  0x48   :  { %1748 = vmatprep.subr.mxu0 %v1360_v47 }
  0x49   :  { %1749 = vmatpush3.msra.mxu0 %v1360_v47  ;;  %v1387_v47 = vld [vmem:[%s2641_s1 + $0x228] sm:$0xff] }
  0x4a   :  { %1750 = vmatprep.subr.mxu0 %v1359_v49 }
  0x4b   :  { %1751 = vmatpush3.msra.mxu0 %v1359_v49  ;;  %v1385_v49 = vld [vmem:[%s2641_s1 + $0x218] sm:$0xff] }
  0x4c   :  { %1752 = vmatprep.subr.mxu0 %v1358_v51 }
  0x4d   :  { %1753 = vmatpush3.msra.mxu0 %v1358_v51  ;;  %v1383_v51 = vld [vmem:[%s2641_s1 + $0x208] sm:$0xff] }
  0xee   :  { %v1680_v57 = vpop.f32.mrf.mxu0 }
  0xef   :  { %v2245_v60 = vadd.f32 %v1680_v57, %v64_v56  ;;  %v1428_v57 = vld [vmem:[%s2641_s1 + $0x370] sm:$0xff] }
  0xf0   :  { %v131_v58 = vpop.f32.mrf.mxu0 }
  0xf1   :  { %v2243_v59 = vadd.f32 %v131_v58, %v64_v56  ;;  %v1427_v58 = vld [vmem:[%s2641_s1 + $0x368] sm:$0xff] }
  0xf2   :  { %v1683_v61 = vpop.f32.mrf.mxu0 }
  0xf3   :  { %1716 = vmatprep.mubr.f32.mxu1 %v2243_v59  ;;  %1754 = vmatprep.mubr.f32.mxu0 %v2243_v59  ;;  %v2253_v0 = vadd.f32 %v1683_v61, %v64_v56  ;;  %v1424_v61 = vld [vmem:[%s2641_s1 + $0x350] sm:$0xff] }
  0xf4   :  { %v141_v62 = vpop.f32.mrf.mxu0  ;;  %1717 = vmatmul.mubr.f32.vlgmr.msra.gmra.mxu1 %v2245_v60  ;;  %1755 = vmatmul.mubr.f32.vlgmr.msra.gmra.mxu0 %v2245_v60 }
  0xf5   :  { %v2251_v63 = vadd.f32 %v141_v62, %v64_v56  ;;  %v2397_v56 = vld [vmem:[%s2641_s1 + $0x3f8] sm:$0xff]  ;;  %v1423_v62 = vld [vmem:[%s2641_s1 + $0x348] sm:$0xff] }
  0xf7   :  { %1719 = vmatprep.mubr.f32.mxu1 %v2251_v63  ;;  %1757 = vmatprep.mubr.f32.mxu0 %v2251_v63 }
  0xf8   :  { %1720 = vmatmul.mubr.f32.gmra.mxu1 %v2253_v0  ;;  %1758 = vmatmul.mubr.f32.gmra.mxu0 %v2253_v0 }
  0xf9   :  { %1768 = vmatprep.mubr.msk.f32.mxu1 %vm371_vm0, %v2259_v1  ;;  %1820 = vmatprep.mubr.msk.f32.mxu0 %vm371_vm0, %v2263_v2 }
 0x1b4   :  { %v1718_v3 = vpop.f32.mrf.mxu1  ;;  %v1756_v5 = vpop.f32.mrf.mxu0 }
 0x1b6   :  { %v250_v6 = vpop.f32.mrf.mxu1  ;;  %v352_v7 = vpop.f32.mrf.mxu0 }
 0x1b8   :  { %v1721_v8 = vpop.f32.mrf.mxu1  ;;  %v1759_v9 = vpop.f32.mrf.mxu0 }
 0x1b9   :  { %1760 = vmatprep.subr.mxu1 %v1721_v8  ;;  %1812 = vmatprep.subr.mxu0 %v1759_v9 }
 0x1ba   :  { %v260_v10 = vpop.f32.mrf.mxu1  ;;  %v362_v11 = vpop.f32.mrf.mxu0  ;;  %1761 = vmatpush3.msra.mxu1 %v1721_v8  ;;  %1813 = vmatpush3.msra.mxu0 %v1759_v9 }
 0x1bb   :  { %1762 = vmatprep.subr.mxu1 %v260_v10  ;;  %1814 = vmatprep.subr.mxu0 %v362_v11 }
 0x1bc   :  { %1763 = vmatpush3.msra.mxu1 %v260_v10  ;;  %1815 = vmatpush3.msra.mxu0 %v362_v11 }
 0x1bd   :  { %1764 = vmatprep.subr.mxu1 %v1718_v3  ;;  %1816 = vmatprep.subr.mxu0 %v1756_v5 }
 0x1be   :  { %1765 = vmatpush3.msra.mxu1 %v1718_v3  ;;  %1817 = vmatpush3.msra.mxu0 %v1756_v5  ;;  %v1420_v3 = vld [vmem:[%s2641_s1 + $0x330] sm:$0xff]  ;;  %v1419_v5 = vld [vmem:[%s2641_s1 + $0x328] sm:$0xff] }
 0x1bf   :  { %1766 = vmatprep.subr.mxu1 %v250_v6  ;;  %1818 = vmatprep.subr.mxu0 %v352_v7 }
 0x1c0   :  { %1767 = vmatpush3.msra.mxu1 %v250_v6  ;;  %1819 = vmatpush3.msra.mxu0 %v352_v7  ;;  %v1418_v6 = vld [vmem:[%s2641_s1 + $0x320] sm:$0xff]  ;;  %v1417_v7 = vld [vmem:[%s2641_s1 + $0x318] sm:$0xff] }
 0x1c1   :  { %1769 = vmatmul.mubr.msk.f32.vlgmr.msra.gmra.mxu1 %vm371_vm0, %v2267_v12  ;;  %1774 = vmatprep.subr.mxu1 %v1341_v13 }
 0x1c2   :  { %1775 = vmatpush3.msra.mxu1 %v1341_v13  ;;  %1771 = vmatprep.mubr.msk.f32.mxu1 %vm371_vm0, %v2272_v14  ;;  %v657_v13 = vsub.s32 1, %v2234_v53 }
 0x1c3   :  { %1776 = vmatprep.subr.mxu1 %v1340_v15  ;;  %1821 = vmatmul.mubr.msk.f32.vlgmr.msra.gmra.mxu0 %vm371_vm0, %v2277_v16 }
 0x1c4   :  { %1777 = vmatpush3.msra.mxu1 %v1340_v15  ;;  %1823 = vmatprep.mubr.msk.f32.mxu0 %vm371_vm0, %v2281_v17 }
 0x1c5   :  { %1772 = vmatmul.mubr.msk.f32.gmra.mxu1 %vm371_vm0, %v2285_v18  ;;  %1778 = vmatprep.subr.mxu1 %v1339_v19 }
 0x1c6   :  { %1779 = vmatpush3.msra.mxu1 %v1339_v19  ;;  %1806 = vmatprep.mubr.f32.mxu1 %v2243_v59  ;;  %v1426_v59 = vld [vmem:[%s2641_s1 + $0x360] sm:$0xff] }
 0x1c7   :  { %1780 = vmatprep.subr.mxu1 %v1338_v20  ;;  %1824 = vmatmul.mubr.msk.f32.gmra.mxu0 %vm371_vm0, %v2297_v21 }
 0x1c8   :  { %1781 = vmatpush3.msra.mxu1 %v1338_v20  ;;  %1826 = vmatprep.subr.mxu0 %v1397_v37 }
 0x1c9   :  { %1782 = vmatprep.subr.mxu1 %v1337_v22  ;;  %1827 = vmatpush3.msra.mxu0 %v1397_v37  ;;  %v681_v37 = vsub.s32 5, %v2234_v53 }
 0x1ca   :  { %1783 = vmatpush3.msra.mxu1 %v1337_v22  ;;  %1828 = vmatprep.subr.mxu0 %v1396_v38 }
 0x1cb   :  { %1784 = vmatprep.subr.mxu1 %v1336_v23  ;;  %1829 = vmatpush3.msra.mxu0 %v1396_v38 }
 0x1cc   :  { %1785 = vmatpush3.msra.mxu1 %v1336_v23  ;;  %1830 = vmatprep.subr.mxu0 %v1395_v39  ;;  %v658_v23 = vrot.slane %v2240_v55, %v657_v13  ;;  %v1436_v13 = vld [vmem:[%s2641_s1 + $0x3b0] sm:$0xff] }
 0x1cd   :  { %1786 = vmatprep.subr.mxu1 %v1335_v24  ;;  %1831 = vmatpush3.msra.mxu0 %v1395_v39 }
 0x1ce   :  { %1787 = vmatpush3.msra.mxu1 %v1335_v24  ;;  %1832 = vmatprep.subr.mxu0 %v1394_v40  ;;  %v673_v24 = vsub.s32 4, %v2234_v53 }
 0x1cf   :  { %1788 = vmatprep.subr.mxu1 %v1334_v25  ;;  %1833 = vmatpush3.msra.mxu0 %v1394_v40 }
 0x1d0   :  { %1789 = vmatpush3.msra.mxu1 %v1334_v25  ;;  %1834 = vmatprep.subr.mxu0 %v1393_v41 }
 0x1d1   :  { %1790 = vmatprep.subr.mxu1 %v1333_v26  ;;  %1835 = vmatpush3.msra.mxu0 %v1393_v41 }
 0x1d2   :  { %1791 = vmatpush3.msra.mxu1 %v1333_v26  ;;  %1836 = vmatprep.subr.mxu0 %v1392_v42 }
 0x1d3   :  { %1792 = vmatprep.subr.mxu1 %v1332_v27  ;;  %1837 = vmatpush3.msra.mxu0 %v1392_v42 }
 0x1d4   :  { %1793 = vmatpush3.msra.mxu1 %v1332_v27  ;;  %1838 = vmatprep.subr.mxu0 %v1391_v43 }
 0x1d5   :  { %1794 = vmatprep.subr.mxu1 %v1331_v28  ;;  %1839 = vmatpush3.msra.mxu0 %v1391_v43 }
 0x1d6   :  { %1795 = vmatpush3.msra.mxu1 %v1331_v28  ;;  %1840 = vmatprep.subr.mxu0 %v1390_v44 }
 0x1d7   :  { %1796 = vmatprep.subr.mxu1 %v1330_v29  ;;  %1841 = vmatpush3.msra.mxu0 %v1390_v44 }
 0x1d8   :  { %1797 = vmatpush3.msra.mxu1 %v1330_v29  ;;  %1842 = vmatprep.subr.mxu0 %v1389_v45 }
 0x1d9   :  { %1798 = vmatprep.subr.mxu1 %v1329_v31  ;;  %1843 = vmatpush3.msra.mxu0 %v1389_v45 }
 0x1da   :  { %1799 = vmatpush3.msra.mxu1 %v1329_v31  ;;  %1844 = vmatprep.subr.mxu0 %v1388_v46 }
 0x1db   :  { %1800 = vmatprep.subr.mxu1 %v1328_v33  ;;  %1845 = vmatpush3.msra.mxu0 %v1388_v46 }
 0x1dc   :  { %1801 = vmatpush3.msra.mxu1 %v1328_v33  ;;  %1846 = vmatprep.subr.mxu0 %v1387_v47 }
 0x1dd   :  { %1802 = vmatprep.subr.mxu1 %v1327_v35  ;;  %1847 = vmatpush3.msra.mxu0 %v1387_v47 }
 0x1de   :  { %1803 = vmatpush3.msra.mxu1 %v1327_v35  ;;  %1848 = vmatprep.subr.mxu0 %v1386_v48 }
 0x1df   :  { %1804 = vmatprep.subr.mxu1 %v1326_v36  ;;  %1849 = vmatpush3.msra.mxu0 %v1386_v48  ;;  %v682_v48 = vrot.slane %v2240_v55, %v681_v37 }
 0x1e0   :  { %1805 = vmatpush3.msra.mxu1 %v1326_v36  ;;  %1850 = vmatprep.subr.mxu0 %v1385_v49  ;;  %v674_v36 = vrot.slane %v2240_v55, %v673_v24  ;;  %v1415_v24 = vld [vmem:[%s2641_s1 + $0x308] sm:$0xff] }
 0x1e1   :  { %1807 = vmatmul.mubr.f32.vlgmr.msra.gmra.mxu1 %v2245_v60  ;;  %1851 = vmatpush3.msra.mxu0 %v1385_v49  ;;  %v1425_v60 = vld [vmem:[%s2641_s1 + $0x358] sm:$0xff] }
 0x1e2   :  { %1809 = vmatprep.mubr.f32.mxu1 %v2251_v63  ;;  %1852 = vmatprep.subr.mxu0 %v1384_v50  ;;  %v1422_v63 = vld [vmem:[%s2641_s1 + $0x340] sm:$0xff] }
 0x1e3   :  { %1853 = vmatpush3.msra.mxu0 %v1384_v50  ;;  %1864 = vmatprep.subr.mxu1 %v1429_v54 }
 0x1e4   :  { %1854 = vmatprep.subr.mxu0 %v1383_v51  ;;  %1865 = vmatpush3.msra.mxu1 %v1429_v54 }
 0x1e5   :  { %1810 = vmatmul.mubr.f32.gmra.mxu1 %v2253_v0  ;;  %1855 = vmatpush3.msra.mxu0 %v1383_v51  ;;  %v1421_v0 = vld [vmem:[%s2641_s1 + $0x338] sm:$0xff] }
 0x1e6   :  { %1856 = vmatprep.subr.mxu0 %v1382_v52  ;;  %1866 = vmatprep.subr.mxu1 %v1428_v57 }
 0x1e7   :  { %1857 = vmatpush3.msra.mxu0 %v1382_v52  ;;  %1867 = vmatpush3.msra.mxu1 %v1428_v57 }
 0x1e8   :  { %1902 = vmatprep.subr.mxu0 %v2397_v56  ;;  %1868 = vmatprep.subr.mxu1 %v1427_v58 }
 0x1e9   :  { %1869 = vmatpush3.msra.mxu1 %v1427_v58 }
 0x1ea   :  { %1870 = vmatprep.subr.mxu1 %v1426_v59 }
 0x1eb   :  { %1871 = vmatpush3.msra.mxu1 %v1426_v59 }
 0x1ec   :  { %1872 = vmatprep.subr.mxu1 %v1425_v60 }
 0x1ed   :  { %1873 = vmatpush3.msra.mxu1 %v1425_v60 }
 0x1ee   :  { %1874 = vmatprep.subr.mxu1 %v1424_v61 }
 0x1ef   :  { %1875 = vmatpush3.msra.mxu1 %v1424_v61 }
 0x1f0   :  { %1876 = vmatprep.subr.mxu1 %v1423_v62 }
 0x1f1   :  { %1877 = vmatpush3.msra.mxu1 %v1423_v62 }
 0x1f2   :  { %1878 = vmatprep.subr.mxu1 %v1422_v63 }
 0x1f3   :  { %1879 = vmatpush3.msra.mxu1 %v1422_v63 }
 0x1f4   :  { %1880 = vmatprep.subr.mxu1 %v1421_v0 }
 0x1f5   :  { %1881 = vmatpush3.msra.mxu1 %v1421_v0 }
 0x1f6   :  { %1882 = vmatprep.subr.mxu1 %v1420_v3 }
 0x1f7   :  { %1883 = vmatpush3.msra.mxu1 %v1420_v3 }
 0x1f8   :  { %1884 = vmatprep.subr.mxu1 %v1419_v5 }
 0x1f9   :  { %1885 = vmatpush3.msra.mxu1 %v1419_v5  ;;  %v1443_v5 = vld [vmem:[%s2641_s1 + $0x3e8] sm:$0xff] }
 0x1fa   :  { %1886 = vmatprep.subr.mxu1 %v1418_v6 }
 0x1fb   :  { %1887 = vmatpush3.msra.mxu1 %v1418_v6 }
 0x1fc   :  { %1888 = vmatprep.subr.mxu1 %v1417_v7 }
 0x1fd   :  { %1889 = vmatpush3.msra.mxu1 %v1417_v7  ;;  %v1442_v7 = vld [vmem:[%s2641_s1 + $0x3e0] sm:$0xff] }
 0x281   :  { %v1770_v8 = vpop.f32.mrf.mxu1 }
 0x283   :  { %v450_v9 = vpop.f32.mrf.mxu1  ;;  %v1822_v11 = vpop.f32.mrf.mxu0 }
 0x285   :  { %v1773_v10 = vpop.f32.mrf.mxu1  ;;  %v632_v20 = vpop.f32.mrf.mxu0 }
 0x287   :  { %v460_v15 = vpop.f32.mrf.mxu1  ;;  %v1825_v29 = vpop.f32.mrf.mxu0 }
 0x289   :  { %v642_v43 = vpop.f32.mrf.mxu0 }
 0x2a1   :  { %v1808_v19 = vpop.f32.mrf.mxu1 }
 0x2a2   :  { %v541_v22 = vadd.f32 %v1808_v19, %v1770_v8  ;;  %v1440_v8 = vld [vmem:[%s2641_s1 + $0x3d0] sm:$0xff]  ;;  %v1434_v19 = vld [vmem:[%s2641_s1 + $0x3a0] sm:$0xff] }
 0x2a3   :  { %v535_v25 = vpop.f32.mrf.mxu1 }
 0x2a4   :  { %v652_v26 = vadd.f32 %v1822_v11, %v541_v22  ;;  %v536_v27 = vadd.f32 %v535_v25, %v450_v9  ;;  %v1439_v9 = vld [vmem:[%s2641_s1 + $0x3c8] sm:$0xff]  ;;  %v1437_v11 = vld [vmem:[%s2641_s1 + $0x3b8] sm:$0xff]  ;;  %v1416_v22 = vld [vmem:[%s2641_s1 + $0x310] sm:$0xff] }
 0x2a5   :  { %v1811_v28 = vpop.f32.mrf.mxu1  ;;  %1890 = vmatprep.subr.mxu1 %v1416_v22  ;;  %v1431_v25 = vld [vmem:[%s2641_s1 + $0x388] sm:$0xff] }
 0x2a6   :  { %v660_v31 = vadd.f32 %v658_v23, %v652_v26  ;;  %v651_v33 = vadd.f32 %v632_v20, %v536_v27  ;;  %v551_v35 = vadd.f32 %v1811_v28, %v1773_v10  ;;  %v1438_v10 = vld [vmem:[%s2641_s1 + $0x3c0] sm:$0xff]  ;;  %v1433_v20 = vld [vmem:[%s2641_s1 + $0x398] sm:$0xff]  ;;  %1891 = vmatpush3.msra.mxu1 %v1416_v22  ;;  %v710_v28 = vsub.s32 2, %v2234_v53 }
 0x2a7   :  { %v545_v38 = vpop.f32.mrf.mxu1  ;;  %1892 = vmatprep.subr.mxu1 %v1415_v24  ;;  %v1414_v26 = vld [vmem:[%s2641_s1 + $0x300] sm:$0xff]  ;;  %v1303_v22 = vsub.s32 7, %v2234_v53 }
 0x2a8   :  { %v664_v39 = vadd.f32 %v660_v31, %v2162_v30  ;;  %v659_v40 = vadd.f32 %v658_v23, %v651_v33  ;;  %v654_v41 = vadd.f32 %v1825_v29, %v551_v35  ;;  %v546_v42 = vadd.f32 %v545_v38, %v460_v15  ;;  %v1435_v15 = vld [vmem:[%s2641_s1 + $0x3a8] sm:$0xff]  ;;  %1893 = vmatpush3.msra.mxu1 %v1415_v24  ;;  %v1430_v27 = vld [vmem:[%s2641_s1 + $0x380] sm:$0xff] }
 0x2a9   :  { %1894 = vmatprep.subr.mxu1 %v1414_v26  ;;  %v711_v29 = vrot.slane %v2240_v55, %v710_v28 }
 0x2aa   :  { %v668_v44 = vmax.f32 %v664_v39, 0.0  ;;  %v663_v45 = vadd.f32 %v659_v40, %v2081_v4  ;;  %v662_v46 = vadd.f32 %v658_v23, %v654_v41  ;;  %v653_v47 = vadd.f32 %v642_v43, %v546_v42  ;;  %1895 = vmatpush3.msra.mxu1 %v1414_v26 }
 0x2ac   :  { %v676_v49 = vmul.f32 %v674_v36, %v668_v44  ;;  %v667_v50 = vmax.f32 %v663_v45, 0.0  ;;  %v666_v51 = vadd.f32 %v662_v46, %v2180_v34  ;;  %v661_v52 = vadd.f32 %v658_v23, %v653_v47  ;;  %v1432_v23 = vld [vmem:[%s2641_s1 + $0x390] sm:$0xff] }
 0x2ae   :  { %v670_v54 = vmax.f32 %v666_v51, 0.0  ;;  %v665_v57 = vadd.f32 %v661_v52, %v2170_v32  ;;  %v675_v30 = vmul.f32 %v674_v36, %v667_v50  ;;  %v2446_v58 = vadd.f32 %v682_v48, %v676_v49  ;;  %v1444_v32 = vld [vmem:[%s2641_s1 + $0x3f0] sm:$0xff]  ;;  %v1411_v49 = vld [vmem:[%s2641_s1 + $0x2e8] sm:$0xff]  ;;  %v1410_v50 = vld [vmem:[%s2641_s1 + $0x2e0] sm:$0xff] }
 0x2af   :  { %v1403_v51 = vld [vmem:[%s2641_s1 + $0x2a8] sm:$0xff]  ;;  %v1402_v52 = vld [vmem:[%s2641_s1 + $0x2a0] sm:$0xff] }
 0x2b0   :  { %v669_v59 = vmax.f32 %v665_v57, 0.0  ;;  %v2448_v60 = vadd.f32 %v682_v48, %v675_v30  ;;  %v678_v61 = vmul.f32 %v674_v36, %v670_v54  ;;  %v688_v63 = vmax.f32 %v2446_v58, 0.0  ;;  %v1401_v54 = vld [vmem:[%s2641_s1 + $0x298] sm:$0xff]  ;;  %v1400_v57 = vld [vmem:[%s2641_s1 + $0x290] sm:$0xff]  ;;  %v1399_v30 = vld [vmem:[%s2641_s1 + $0x288] sm:$0xff] }
 0x2b2   :  { %v687_v4 = vmax.f32 %v2448_v60, 0.0  ;;  %v677_v62 = vmul.f32 %v674_v36, %v669_v59  ;;  %v2452_v0 = vadd.f32 %v682_v48, %v678_v61  ;;  %v1398_v59 = vld [vmem:[%s2641_s1 + $0x280] sm:$0xff] }
 0x2b4   :  { %1858 = vmatprep.mubr.f32.mxu0 %v687_v4  ;;  %v2456_v34 = vadd.f32 %v682_v48, %v677_v62  ;;  %v690_v6 = vmax.f32 %v2452_v0, 0.0  ;;  %v2010_v0 = vld [vmem:[%s2640_s0] sm:$0xff] }
 0x2b5   :  { %1859 = vmatmul.mubr.f32.vlgmr.msra.gmra.mxu0 %v688_v63 }
 0x2b6   :  { %v689_v3 = vmax.f32 %v2456_v34, 0.0  ;;  %1903 = vmatpush3.msra.mxu0 %v2397_v56  ;;  %v1441_v56 = vld [vmem:[%s2641_s1 + $0x3d8] sm:$0xff] }
 0x2b7   :  { %1904 = vmatprep.subr.mxu0 %v1444_v32 }
 0x2b8   :  { %1861 = vmatprep.mubr.f32.mxu0 %v689_v3  ;;  %1905 = vmatpush3.msra.mxu0 %v1444_v32 }
 0x2b9   :  { %1862 = vmatmul.mubr.f32.gmra.mxu0 %v690_v6  ;;  %1906 = vmatprep.subr.mxu0 %v1443_v5 }
 0x2ba   :  { %1907 = vmatpush3.msra.mxu0 %v1443_v5 }
 0x2bb   :  { %1908 = vmatprep.subr.mxu0 %v1442_v7 }
 0x2bc   :  { %1909 = vmatpush3.msra.mxu0 %v1442_v7  ;;  %v1279_v7 = vsub.s32 3, %v2234_v53 }
 0x2bd   :  { %1910 = vmatprep.subr.mxu0 %v1441_v56 }
 0x2be   :  { %1911 = vmatpush3.msra.mxu0 %v1441_v56 }
 0x2bf   :  { %1912 = vmatprep.subr.mxu0 %v1440_v8 }
 0x2c0   :  { %1913 = vmatpush3.msra.mxu0 %v1440_v8 }
 0x2c1   :  { %1914 = vmatprep.subr.mxu0 %v1439_v9 }
 0x2c2   :  { %1915 = vmatpush3.msra.mxu0 %v1439_v9 }
 0x2c3   :  { %1916 = vmatprep.subr.mxu0 %v1438_v10 }
 0x2c4   :  { %1917 = vmatpush3.msra.mxu0 %v1438_v10 }
 0x2c5   :  { %1918 = vmatprep.subr.mxu0 %v1437_v11 }
 0x2c6   :  { %1919 = vmatpush3.msra.mxu0 %v1437_v11  ;;  %v1280_v11 = vrot.slane %v2240_v55, %v1279_v7 }
 0x2c7   :  { %1920 = vmatprep.subr.mxu0 %v1436_v13 }
 0x2c8   :  { %1921 = vmatpush3.msra.mxu0 %v1436_v13  ;;  %v1295_v13 = vsub.s32 6, %v2234_v53 }
 0x2c9   :  { %1922 = vmatprep.subr.mxu0 %v1435_v15 }
 0x2ca   :  { %1923 = vmatpush3.msra.mxu0 %v1435_v15  ;;  %v1296_v28 = vrot.slane %v2240_v55, %v1295_v13 }
 0x2cb   :  { %1924 = vmatprep.subr.mxu0 %v1434_v19 }
 0x2cc   :  { %1925 = vmatpush3.msra.mxu0 %v1434_v19 }
 0x2cd   :  { %1926 = vmatprep.subr.mxu0 %v1433_v20 }
 0x2ce   :  { %1927 = vmatpush3.msra.mxu0 %v1433_v20 }
 0x2cf   :  { %1928 = vmatprep.subr.mxu0 %v1432_v23 }
 0x2d0   :  { %1929 = vmatpush3.msra.mxu0 %v1432_v23 }
 0x2d1   :  { %1930 = vmatprep.subr.mxu0 %v1431_v25 }
 0x2d2   :  { %1931 = vmatpush3.msra.mxu0 %v1431_v25 }
 0x2d3   :  { %1932 = vmatprep.subr.mxu0 %v1430_v27 }
 0x2d4   :  { %1933 = vmatpush3.msra.mxu0 %v1430_v27 }
 0x375   :  { %v1860_v31 = vpop.f32.mrf.mxu0 }
 0x376   :  { %v2523_v36 = vadd.f32 %v1860_v31, %v711_v29 }
 0x377   :  { %v778_v33 = vpop.f32.mrf.mxu0 }
 0x378   :  { %v779_v35 = vadd.f32 %v778_v33, %v711_v29 }
 0x379   :  { %v1863_v37 = vpop.f32.mrf.mxu0 }
 0x37a   :  { %1896 = vmatprep.mubr.f32.mxu1 %v779_v35  ;;  %1934 = vmatprep.mubr.f32.mxu0 %v779_v35  ;;  %v2529_v40 = vadd.f32 %v1863_v37, %v711_v29  ;;  %v1304_v37 = vrot.slane %v2240_v55, %v1303_v22  ;;  %v2009_v55 = vld [vmem:[%s2640_s0 + $0x8] sm:$0xff] }
 0x37b   :  { %v788_v38 = vpop.f32.mrf.mxu0  ;;  %1897 = vmatmul.mubr.f32.vlgmr.msra.gmra.mxu1 %v2523_v36  ;;  %1935 = vmatmul.mubr.f32.vlgmr.msra.gmra.mxu0 %v2523_v36 }
 0x37c   :  { %v2527_v39 = vadd.f32 %v788_v38, %v711_v29 }
 0x37e   :  { %1899 = vmatprep.mubr.f32.mxu1 %v2527_v39  ;;  %1937 = vmatprep.mubr.f32.mxu0 %v2527_v39 }
 0x37f   :  { %1900 = vmatmul.mubr.f32.gmra.mxu1 %v2529_v40  ;;  %1938 = vmatmul.mubr.f32.gmra.mxu0 %v2529_v40 }
 0x380   :  { %1948 = vmatprep.mubr.msk.f32.mxu1 %vm371_vm0, %v2259_v1  ;;  %2000 = vmatprep.mubr.msk.f32.mxu0 %vm371_vm0, %v2263_v2  ;;  %v1413_v1 = vld [vmem:[%s2641_s1 + $0x2f8] sm:$0xff]  ;;  %v1412_v2 = vld [vmem:[%s2641_s1 + $0x2f0] sm:$0xff] }
 0x43b   :  { %v1898_v41 = vpop.f32.mrf.mxu1  ;;  %v1936_v42 = vpop.f32.mrf.mxu0 }
 0x43d   :  { %v897_v43 = vpop.f32.mrf.mxu1  ;;  %v999_v44 = vpop.f32.mrf.mxu0 }
 0x43f   :  { %v1901_v45 = vpop.f32.mrf.mxu1  ;;  %v1939_v46 = vpop.f32.mrf.mxu0 }
 0x440   :  { %1940 = vmatprep.subr.mxu1 %v1901_v45  ;;  %1992 = vmatprep.subr.mxu0 %v1939_v46 }
 0x441   :  { %v907_v47 = vpop.f32.mrf.mxu1  ;;  %v1009_v48 = vpop.f32.mrf.mxu0  ;;  %1941 = vmatpush3.msra.mxu1 %v1901_v45  ;;  %1993 = vmatpush3.msra.mxu0 %v1939_v46 }
 0x442   :  { %1942 = vmatprep.subr.mxu1 %v907_v47  ;;  %1994 = vmatprep.subr.mxu0 %v1009_v48 }
 0x443   :  { %1943 = vmatpush3.msra.mxu1 %v907_v47  ;;  %1995 = vmatpush3.msra.mxu0 %v1009_v48 }
 0x444   :  { %1944 = vmatprep.subr.mxu1 %v1898_v41  ;;  %1996 = vmatprep.subr.mxu0 %v1936_v42 }
 0x445   :  { %1945 = vmatpush3.msra.mxu1 %v1898_v41  ;;  %1997 = vmatpush3.msra.mxu0 %v1936_v42 }
 0x446   :  { %1946 = vmatprep.subr.mxu1 %v897_v43  ;;  %1998 = vmatprep.subr.mxu0 %v999_v44 }
 0x447   :  { %1947 = vmatpush3.msra.mxu1 %v897_v43  ;;  %1999 = vmatpush3.msra.mxu0 %v999_v44 }
 0x448   :  { %1949 = vmatmul.mubr.msk.f32.vlgmr.msra.gmra.mxu1 %vm371_vm0, %v2267_v12  ;;  %1954 = vmatprep.subr.mxu1 %v1413_v1  ;;  %v1409_v12 = vld [vmem:[%s2641_s1 + $0x2d8] sm:$0xff] }
 0x449   :  { %1955 = vmatpush3.msra.mxu1 %v1413_v1  ;;  %1951 = vmatprep.mubr.msk.f32.mxu1 %vm371_vm0, %v2272_v14  ;;  %v1408_v14 = vld [vmem:[%s2641_s1 + $0x2d0] sm:$0xff] }
 0x44a   :  { %1956 = vmatprep.subr.mxu1 %v1412_v2  ;;  %2001 = vmatmul.mubr.msk.f32.vlgmr.msra.gmra.mxu0 %vm371_vm0, %v2277_v16  ;;  %v1407_v16 = vld [vmem:[%s2641_s1 + $0x2c8] sm:$0xff] }
 0x44b   :  { %1957 = vmatpush3.msra.mxu1 %v1412_v2  ;;  %2003 = vmatprep.mubr.msk.f32.mxu0 %vm371_vm0, %v2281_v17  ;;  %v1406_v17 = vld [vmem:[%s2641_s1 + $0x2c0] sm:$0xff] }
 0x44c   :  { %1952 = vmatmul.mubr.msk.f32.gmra.mxu1 %vm371_vm0, %v2285_v18  ;;  %1958 = vmatprep.subr.mxu1 %v1411_v49  ;;  %v1405_v18 = vld [vmem:[%s2641_s1 + $0x2b8] sm:$0xff] }
 0x44d   :  { %1959 = vmatpush3.msra.mxu1 %v1411_v49  ;;  %1986 = vmatprep.mubr.f32.mxu1 %v779_v35 }
 0x44e   :  { %1960 = vmatprep.subr.mxu1 %v1410_v50  ;;  %2004 = vmatmul.mubr.msk.f32.gmra.mxu0 %vm371_vm0, %v2297_v21  ;;  %v1404_v21 = vld [vmem:[%s2641_s1 + $0x2b0] sm:$0xff] }
 0x44f   :  { %1961 = vmatpush3.msra.mxu1 %v1410_v50 }
 0x450   :  { %1962 = vmatprep.subr.mxu1 %v1409_v12 }
 0x451   :  { %1963 = vmatpush3.msra.mxu1 %v1409_v12 }
 0x452   :  { %1964 = vmatprep.subr.mxu1 %v1408_v14 }
 0x453   :  { %1965 = vmatpush3.msra.mxu1 %v1408_v14 }
 0x454   :  { %1966 = vmatprep.subr.mxu1 %v1407_v16 }
 0x455   :  { %1967 = vmatpush3.msra.mxu1 %v1407_v16 }
 0x456   :  { %1968 = vmatprep.subr.mxu1 %v1406_v17 }
 0x457   :  { %1969 = vmatpush3.msra.mxu1 %v1406_v17  ;;  %v2012_v17 = vld [vmem:[%s2640_s0 + $0x10] sm:$0xff] }
 0x458   :  { %1970 = vmatprep.subr.mxu1 %v1405_v18 }
 0x459   :  { %1971 = vmatpush3.msra.mxu1 %v1405_v18 }
 0x45a   :  { %1972 = vmatprep.subr.mxu1 %v1404_v21 }
 0x45b   :  { %1973 = vmatpush3.msra.mxu1 %v1404_v21 }
 0x45c   :  { %1974 = vmatprep.subr.mxu1 %v1403_v51 }
 0x45d   :  { %1975 = vmatpush3.msra.mxu1 %v1403_v51 }
 0x45e   :  { %1976 = vmatprep.subr.mxu1 %v1402_v52 }
 0x45f   :  { %1977 = vmatpush3.msra.mxu1 %v1402_v52 }
 0x460   :  { %1978 = vmatprep.subr.mxu1 %v1401_v54 }
 0x461   :  { %1979 = vmatpush3.msra.mxu1 %v1401_v54 }
 0x462   :  { %1980 = vmatprep.subr.mxu1 %v1400_v57 }
 0x463   :  { %1981 = vmatpush3.msra.mxu1 %v1400_v57 }
 0x464   :  { %1982 = vmatprep.subr.mxu1 %v1399_v30 }
 0x465   :  { %1983 = vmatpush3.msra.mxu1 %v1399_v30 }
 0x466   :  { %1984 = vmatprep.subr.mxu1 %v1398_v59 }
 0x467   :  { %1985 = vmatpush3.msra.mxu1 %v1398_v59 }
 0x468   :  { %1987 = vmatmul.mubr.f32.vlgmr.msra.gmra.mxu1 %v2523_v36 }
 0x469   :  { %1989 = vmatprep.mubr.f32.mxu1 %v2527_v39 }
 0x46c   :  { %1990 = vmatmul.mubr.f32.gmra.mxu1 %v2529_v40 }
 0x508   :  { %v1950_v61 = vpop.f32.mrf.mxu1 }
 0x50a   :  { %v1084_v62 = vpop.f32.mrf.mxu1  ;;  %v2002_v5 = vpop.f32.mrf.mxu0 }
 0x50c   :  { %v1953_v32 = vpop.f32.mrf.mxu1  ;;  %v1254_v9 = vpop.f32.mrf.mxu0 }
 0x50e   :  { %v1094_v56 = vpop.f32.mrf.mxu1  ;;  %v2005_v24 = vpop.f32.mrf.mxu0 }
 0x510   :  { %v1264_v38 = vpop.f32.mrf.mxu0 }
 0x528   :  { %v1988_v8 = vpop.f32.mrf.mxu1 }
 0x529   :  { %v1175_v10 = vadd.f32 %v1988_v8, %v1950_v61 }
 0x52a   :  { %v1169_v15 = vpop.f32.mrf.mxu1 }
 0x52b   :  { %v1274_v19 = vadd.f32 %v2002_v5, %v1175_v10  ;;  %v1170_v20 = vadd.f32 %v1169_v15, %v1084_v62 }
 0x52c   :  { %v1991_v23 = vpop.f32.mrf.mxu1 }
 0x52d   :  { %v1282_v25 = vadd.f32 %v1280_v11, %v1274_v19  ;;  %v1273_v26 = vadd.f32 %v1254_v9, %v1170_v20  ;;  %v1185_v27 = vadd.f32 %v1991_v23, %v1953_v32 }
 0x52e   :  { %v1179_v29 = vpop.f32.mrf.mxu1 }
 0x52f   :  { %v1286_v31 = vadd.f32 %v1282_v25, %v688_v63  ;;  %v1281_v33 = vadd.f32 %v1280_v11, %v1273_v26  ;;  %v1276_v35 = vadd.f32 %v2005_v24, %v1185_v27  ;;  %v1180_v36 = vadd.f32 %v1179_v29, %v1094_v56 }
 0x531   :  { %v1290_v39 = vmax.f32 %v1286_v31, 0.0  ;;  %v1285_v53 = vadd.f32 %v1281_v33, %v687_v4  ;;  %v1284_v40 = vadd.f32 %v1280_v11, %v1276_v35  ;;  %v1275_v41 = vadd.f32 %v1264_v38, %v1180_v36 }
 0x533   :  { %v1298_v42 = vmul.f32 %v1296_v28, %v1290_v39  ;;  %v1289_v43 = vmax.f32 %v1285_v53, 0.0  ;;  %v1288_v44 = vadd.f32 %v1284_v40, %v690_v6  ;;  %v1283_v45 = vadd.f32 %v1280_v11, %v1275_v41 }
 0x535   :  { %v1306_v58 = vadd.f32 %v1304_v37, %v1298_v42  ;;  %v1297_v63 = vmul.f32 %v1296_v28, %v1289_v43  ;;  %v1292_v46 = vmax.f32 %v1288_v44, 0.0  ;;  %v1287_v47 = vadd.f32 %v1283_v45, %v689_v3  ;;  %v2011_v3 = vld [vmem:[%s2640_s0 + $0x18] sm:$0xff] }
 0x537   :  { %v1310_v60 = vadd.f32 %v2009_v55, %v1306_v58  ;;  %v1305_v4 = vadd.f32 %v1304_v37, %v1297_v63  ;;  %v1300_v48 = vmul.f32 %v1296_v28, %v1292_v46  ;;  %v1291_v1 = vmax.f32 %v1287_v47, 0.0 }
 0x539   :  { %v1314_v2 = vmax.f32 %v1310_v60, 0.0  ;;  %v1309_v6 = vadd.f32 %v2010_v0, %v1305_v4  ;;  %v1308_v49 = vadd.f32 %v1304_v37, %v1300_v48  ;;  %v1299_v50 = vmul.f32 %v1296_v28, %v1291_v1 }
 0x53b   :  { %1318 = vst [vmem:[%s2644_s4 + $0x8] sm:$0xff] %v1314_v2  ;;  %v1313_v34 = vmax.f32 %v1309_v6, 0.0  ;;  %v1312_v12 = vadd.f32 %v2011_v3, %v1308_v49  ;;  %v1307_v14 = vadd.f32 %v1304_v37, %v1299_v50 }
 0x53d   :  { %1317 = vst [vmem:[%s2644_s4] sm:$0xff] %v1313_v34  ;;  %v1316_v16 = vmax.f32 %v1312_v12, 0.0  ;;  %v1311_v18 = vadd.f32 %v2012_v17, %v1307_v14 }
 0x53f   :  { %1320 = vst [vmem:[%s2644_s4 + $0x18] sm:$0xff] %v1316_v16  ;;  %v1315_v21 = vmax.f32 %v1311_v18, 0.0 }
 0x541   :  { %1319 = vst [vmem:[%s2644_s4 + $0x10] sm:$0xff] %v1315_v21 }
 0x542   :  { %1325 = vsyncpa [#allocation3], 1 }

</bundles_post_ra>
